<compile_context>
chip_gen: v6e
topology: v6e:2x2x1
jax: 0.10.0
libtpu: 0.0.40
codegen_flags: <defaults>
</compile_context>

<pallas_src>
import jax
import jax.numpy as jnp
from jax.experimental import pallas as pl
from jax.experimental.pallas import tpu as pltpu


def _poly_deg1_kernel(w_ref, x_ref, o_ref):
    # w_ref: (4,) f32 scalars in SMEM.
    # x_ref: (2, rpb, 128) tile in VMEM, native input dtype (feature-major).
    # o_ref: (rpb, 128) f32 tile in VMEM.
    a1 = w_ref[0]
    a2 = w_ref[1]
    a3 = w_ref[2]
    x0 = x_ref[0].astype(jnp.float32)   # (rpb, 128) lane-dense
    x1 = x_ref[1].astype(jnp.float32)
    # Fused multiply-adds over fully lane-dense vregs (pure VPU, unmasked stores).
    o_ref[...] = a1 * x0 + a2 * x1 + a3


def poly_deg1(weights, X, *, rows_per_block=4096, small_n_threshold=2048):
    """weights: (4,), X: (N, F>=2) -> (N,) f32 (degree-1 polynomial of the module)."""
    if X.ndim != 2 or X.shape[1] < 2:
        raise ValueError("X must be (N, F) with F >= 2 (degree==1 uses X[:,0], X[:,1]).")
    N = X.shape[0]
    out_dtype = jnp.float32
    w = weights.astype(jnp.float32)

    if N == 0:
        return jnp.zeros((0,), out_dtype)

    # Small-N fast path: kernel dispatch + wrapper fusions dominate below a few
    # thousand samples (the module's own N=20 case lands here).
    # The floor of 2048 also guarantees rows >= 16 on the kernel path.
    if N < max(int(small_n_threshold), 2048):
        return (w[0] * X[:, 0] + w[1] * X[:, 1] + w[2]).astype(out_dtype)

    rows = pl.cdiv(N, 128)          # 128 samples per lane-row
    n_pad = rows * 128              # pad only to a multiple of 128

    # Single coalesced wrapper pass: slice the two used columns, pad (if needed),
    # and lay them out as one feature-major (2, rows, 128) slab.  Native dtype is
    # kept; the f32 cast happens inside the kernel.
    Xc = X[:, :2]
    if n_pad != N:
        Xc = jnp.pad(Xc, ((0, n_pad - N), (0, 0)))
    xs = Xc.T.reshape(2, rows, 128)

    # Tile selection: big tiles amortize the ~0.35us/step overhead, but keep at
    # least ~4 grid steps for mid-sized inputs so v7x megacore has work.  Round
    # to a multiple of 16 so bf16 (16,128) native tiles stay aligned.
    rpb = int(rows_per_block)
    if rows < 2 * rpb:
        rpb = max(16, ((pl.cdiv(rows, 4) + 15) // 16) * 16)
    grid = (pl.cdiv(rows, rpb),)    # ragged last block: OOB writes are dropped

    in_itemsize = jnp.dtype(Xc.dtype).itemsize
    cost = pl.CostEstimate(
        flops=4 * n_pad,
        transcendentals=0,
        bytes_accessed=n_pad * (2 * in_itemsize + 4),
    )

    out = pl.pallas_call(
        _poly_deg1_kernel,
        out_shape=jax.ShapeDtypeStruct((rows, 128), out_dtype),
        grid=grid,
        in_specs=[
            # Scalar weights: untiled, live in SMEM for the whole call.
            pl.BlockSpec(memory_space=pltpu.MemorySpace.SMEM),
            # Stacked feature slab: one DMA per grid step, X read once.
            pl.BlockSpec((2, rpb, 128), lambda i: (0, i, 0)),
        ],
        out_specs=pl.BlockSpec((rpb, 128), lambda i: (i, 0)),
        compiler_params=pltpu.CompilerParams(
            # Independent tiles over N -> shard across TCs on v7x megacore.
            dimension_semantics=("parallel",),
            # Headroom so callers can raise rows_per_block to 8192 on v6e/v7x;
            # 48 MiB stays under every generation's physical VMEM.
            vmem_limit_bytes=48 << 20,
        ),
        cost_estimate=cost,
    )(w, xs)

    out = out.reshape(n_pad)        # free, contiguous reshape
    # Slice only when padding happened (padded tail lanes hold a3).  Under the
    # caller's jit this fuses with downstream consumers.
    return out if n_pad == N else out[:N]


if __name__ == "__main__":
    key = jax.random.PRNGKey(0)
    kw, kx1, kx2, kx3 = jax.random.split(key, 4)

    # Deterministic "Uniform(-1, 1).sample((4,))"-shaped parameter init.
    weights = jax.random.uniform(kw, (4,), jnp.float32, minval=-1.0, maxval=1.0)

    def ref_fn(w, X):
        return w[0] * X[:, 0] + w[1] * X[:, 1] + w[2]

    # 1) Module-scale input (N=20, mirrors np.arange(0, 2, 0.1)) -> fast path.
    X_small = jax.random.uniform(kx1, (20, 2), jnp.float32, minval=0.0, maxval=2.0)
    out_small = jax.block_until_ready(poly_deg1(weights, X_small))
    assert out_small.shape == (20,)
    assert jnp.allclose(out_small, ref_fn(weights, X_small), atol=1e-6, rtol=1e-6)

    # 2) Larger, non-multiple-of-128 input -> Pallas path (pad + ragged last block).
    X_big = jax.random.uniform(kx2, (5000, 2), jnp.float32, minval=-2.0, maxval=2.0)
    out_big = jax.block_until_ready(poly_deg1(weights, X_big))
    assert out_big.shape == (5000,)
    assert jnp.allclose(out_big, ref_fn(weights, X_big), atol=1e-5, rtol=1e-5)

    # 3) bf16 input -> narrow-dtype DMA with in-kernel f32 cast.
    X_bf = jax.random.uniform(kx3, (4096, 2), jnp.float32, minval=-2.0, maxval=2.0)
    X_bf = X_bf.astype(jnp.bfloat16)
    out_bf = jax.block_until_ready(poly_deg1(weights, X_bf))
    assert out_bf.shape == (4096,)
    assert jnp.allclose(out_bf, ref_fn(weights, X_bf), atol=1e-5, rtol=1e-5)

    print("KERNEL_OK")
</pallas_src>

<mosaic_0001>
module attributes {stable_mosaic.version = 11 : i64} {
  func.func @_poly_deg1_kernel(%arg0: i32, %arg1: memref<4xf32, #tpu.memory_space<smem>>, %arg2: memref<2x16x128xf32, #tpu.memory_space<vmem>>, %arg3: memref<16x128xf32, #tpu.memory_space<vmem>>) attributes {dimension_semantics = [#tpu.dimension_semantics<parallel>], iteration_bounds = array<i64: 3>, scalar_prefetch = 0 : i64, scratch_operands = 0 : i64, tpu.core_type = #tpu.core_type<tc>, window_params = [{transform_indices = @transform_0, window_bounds = array<i64: 4>}, {transform_indices = @transform_1, window_bounds = array<i64: 2, 16, 128>}, {transform_indices = @transform_2, window_bounds = array<i64: 16, 128>}]} {
    %c0 = arith.constant 0 : index
    %0 = memref.load %arg1[%c0] : memref<4xf32, #tpu.memory_space<smem>>
    %c1 = arith.constant 1 : index
    %1 = memref.load %arg1[%c1] : memref<4xf32, #tpu.memory_space<smem>>
    %c2 = arith.constant 2 : index
    %2 = memref.load %arg1[%c2] : memref<4xf32, #tpu.memory_space<smem>>
    %c0_0 = arith.constant 0 : index
    %c0_1 = arith.constant 0 : index
    %c0_2 = arith.constant 0 : index
    %3 = vector.load %arg2[%c0_0, %c0_1, %c0_2] : memref<2x16x128xf32, #tpu.memory_space<vmem>>, vector<1x16x128xf32>
    %4 = vector.shape_cast %3 : vector<1x16x128xf32> to vector<16x128xf32>
    %c1_3 = arith.constant 1 : index
    %c0_4 = arith.constant 0 : index
    %c0_5 = arith.constant 0 : index
    %5 = vector.load %arg2[%c1_3, %c0_4, %c0_5] : memref<2x16x128xf32, #tpu.memory_space<vmem>>, vector<1x16x128xf32>
    %6 = vector.shape_cast %5 : vector<1x16x128xf32> to vector<16x128xf32>
    %7 = vector.broadcast %0 : f32 to vector<16x128xf32>
    %8 = arith.mulf %7, %4 : vector<16x128xf32>
    %9 = vector.broadcast %1 : f32 to vector<16x128xf32>
    %10 = arith.mulf %9, %6 : vector<16x128xf32>
    %11 = arith.addf %8, %10 : vector<16x128xf32>
    %12 = vector.broadcast %2 : f32 to vector<16x128xf32>
    %13 = arith.addf %11, %12 : vector<16x128xf32>
    %c0_6 = arith.constant 0 : index
    %c0_7 = arith.constant 0 : index
    %14 = vector.load %arg3[%c0_6, %c0_7] : memref<16x128xf32, #tpu.memory_space<vmem>>, vector<16x128xf32>
    tpu.vector_store %arg3[%c0_6, %c0_7], %13 {strides = array<i32>} : memref<16x128xf32, #tpu.memory_space<vmem>>, vector<16x128xf32>,
    return
  }
  func.func @transform_0(%arg0: i32) -> i32 {
    %c0_i32 = arith.constant 0 : i32
    %c0_i32_0 = arith.constant 0 : i32
    return %c0_i32 : i32
  }
  func.func @transform_1(%arg0: i32) -> (i32, i32, i32) {
    %c0_i32 = arith.constant 0 : i32
    %c0_i32_0 = arith.constant 0 : i32
    %c0_i32_1 = arith.constant 0 : i32
    return %c0_i32, %arg0, %c0_i32_0 : i32, i32, i32
  }
  func.func @transform_2(%arg0: i32) -> (i32, i32) {
    %c0_i32 = arith.constant 0 : i32
    %c0_i32_0 = arith.constant 0 : i32
    return %arg0, %c0_i32 : i32, i32
  }
}

</mosaic_0001>

<bundles_post_ra>
// kernel: tpu_custom_call.1
= control target key start
LH: loop header
LB: loop body
LE: loop exit
PB: predicated region body
PF: predicated region fallthrough
CT: control target
= control target key end

     0   :  { %7 = vsyncpa [#allocation5], 0  ;;  %s696_s0 = inlined_call_operand.hbm [shape: f32[4], index: 0, kind: input, shape index: {}]   ;;  %s697_s1 = inlined_call_operand.hbm [shape: f32[2,40,128], index: 1, kind: input, shape index: {}]   ;;  %s698_s2 = inlined_call_operand.hbm [shape: f32[40,128], index: 2, kind: output, shape index: {}]  }
   0x1   :  { %8 = vsyncpa [#allocation3], 0 }
   0x2   :  { %10 = vsyncpa [#allocation3 + $0x1], 0 }
   0x3   :  { %11 = vsyncpa [#allocation4], 0 }
   0x4   :  { %13 = vsyncpa [#allocation4 + $0x1], 0  ;;  %s539_s9 = smov 0   ;;  %s541_s10 = smov 0  }
   0x5   :  { %s543_s11 = smov 0   ;;  %s545_s12 = smov 0  }
   0x6 LB: > { %s560_s13 = sadd.s32 4294967295, %s513_s12   ;;  %s342_s14 = sadd.s32 4294967294, %s513_s12   ;;  %s513_s12 = sphi %s545_s12, %s707_s12   ;;  %s509_s11 = sphi %s543_s11, %s706_s11   ;;  %s505_s10 = sphi %s541_s10, %s705_s10   ;;  %s501_s9 = sphi %s539_s9, %s704_s9  }
   0x7   : > { %s564_s15 = sadd.s32 1, %s513_s12   ;;  %s47_s16 = sadd.s32 1, %s509_s11 }
   0x8   : > { %s44_s17 = ssub.s32 %s513_s12, %s564_s15  ;;  %p54_p0 = scmp.ne.s32.totalorder %s509_s11, %s505_s10 }
   0x9   : > { %p45_p1 = scmp.eq.s32.totalorder %s44_s17, 0  ;;  %p55_p2 = scmp.eq.s32.totalorder %s513_s12, 0 }
   0xa   : > { %p60_p3 = scmp.ne.s32.totalorder %s505_s10, %s501_s9  ;;  %p61_p4 = scmp.eq.s32.totalorder %s560_s13, 0 }
   0xb   : > { %s576_s18 = scalar_select %p45_p1, %s509_s11, %s47_s16  }
   0xc   : > { %p578_p5 = por %p55_p2, %p54_p0  ;;  %p584_p6 = por %p61_p4, %p60_p3 }
   0xd   : > { %p84_p7 = scmp.eq.s32.totalorder %s560_s13, 2  ;;  %p90_p8 = scmp.eq.s32.totalorder %s342_s14, 2 }
   0xe   : > { %p343_p9 = scmp.ge.s32.totalorder %s513_s12, 1  ;;  %p97_p10 = scmp.lt.s32.totalorder %s513_s12, 4 }
   0xf   : > { %p591_p11 = por %p84_p7, %p54_p0  ;;  %p595_p12 = por %p90_p8, %p60_p3 }
  0x10   : > { %p599_p13 = pnand %p343_p9, %p97_p10  ;;  %s515_s24 = smov [#allocation2]  }
  0x11   : > { %p345_p0 = scmp.ge.s32.totalorder %s513_s12, 3 }
  0x12   : > { %p383_p1 = pneg %p599_p13 }
  0x13   : > { %115 = sbr.rel (%p345_p0) target bundleno = 46 (0x2e), region = 20 }
  0x14   : > { %p384_p2 = pnand %p383_p1, %p61_p4 }
  0x16   : > { %386 = dma.hbm_to_smem (!%p384_p2), %s696_s0, 16, %s515_s24, [#allocation5]  }
  0x18   : > { %118 = sbr.rel (!%p578_p5) target bundleno = 46 (0x2e), region = 24 }
  0x1d   : > { %s119_s27 = sand.u32 1, %s509_s11   ;;  %s347_s28 = sshll.u32 %s513_s12, 1 }
  0x1e   : > { %s346_s29 = sshll.u32 %s119_s27, 5  ;;  %s125_s30 = ssub.s32 5, %s347_s28 }
  0x1f   : > { %p126_p3 = scmp.lt.s32.totalorder %s125_s30, 2  ;;  %s120_s5 = scalar_lea.sflag [#allocation3], %s119_s27 }
  0x20   : > { %s123_s6 = scalar_lea.vmem [#allocation6], %s346_s29 }
  0x21   : > { %s709_s30 = smov (!%p126_p3, %s125_s30), 2 }
  0x22   : > { %s348_s3 = sshll.u32 %s709_s30, 8 }
  0x23   : > { %s130_s4 = ssub.s32 512, %s348_s3 }
  0x24   : > { %131 = vsyncadd %s120_s5, %s130_s4  ;;  %p349_p7 = scmp.ne.s32.totalorder %s348_s3, 0  ;;  %s373_s7 = sshll.u32 %s513_s12, 8 }
  0x25   : > { %s134_s16 = scalar_lea.hbm %s697_s1, %s373_s7  ;;  %s141_s17 = sld [smem:[#allocation0]]  }
  0x26   : > { %s149_s19 = sshll.u32 %s123_s6, 4  ;;  %s516_s24 = smov 640   ;;  %s150_s19 = int_to_ptr.vmem [resolvable:$true] %s149_s19 }
  0x27   : > { %156 = sst [smem:[#allocation9]] %s516_s24  ;;  %s517_s25 = smov 256  }
  0x28   : > { %160 = sst [smem:[#allocation9 + $0x2]] %s709_s30  ;;  %s518_s26 = smov 128  }
  0x29   : > { %158 = sst [smem:[#allocation9 + $0x1]] %s517_s25  ;;  %s519_s29 = smov 8  }
  0x2a   : > { %162 = sst [smem:[#allocation9 + $0x3]] %s518_s26  ;;  %s520_s4 = smov 131072  }
  0x2b   : > { %s353_s27 = sshll.u32 %s141_s17, 26  ;;  %164 = sst [smem:[#allocation9 + $0x4]] %s518_s26 }
  0x2c   : > { %s354_s28 = sadd.s32 134217728, %s353_s27  ;;  %166 = sst [smem:[#allocation9 + $0x5]] %s519_s29 }
  0x2d   : > { %168 = dma.general (%p349_p7), %s134_s16, %s348_s3, %s150_s19, %s120_s5, %s520_s4, [#allocation9], %s354_s28, 0  }
  0x2e PF: > { %174 = sbr.rel (%p599_p13) target bundleno = 100 (0x64), region = 28 }
  0x33   : > { %488 = dma.done.wait (%p61_p4), [#allocation5], 16  }
  0x34   : > { %490 = vsyncadd (%p61_p4), [#allocation5], 4294967280  ;;  %s627_s30 = sand.u32 1, %s505_s10  }
  0x35   : > { %s358_s6 = sshll.u32 %s627_s30, 5  ;;  %s181_s7 = scalar_lea.sflag [#allocation3], %s627_s30 }
  0x36   : > { %s184_s3 = scalar_lea.vmem [#allocation6], %s358_s6 }
  0x37   : > { %492 = dma.done.wait (%p584_p6), %s181_s7, 512  }
  0x38   : > { %494 = vsyncadd (%p584_p6), %s181_s7, 4294966784 }
  0x39   : > { %189 = sfence }
  0x3a   : > { %s216_s23 = sld [smem:[#allocation2]]  ;;  %v219_v0 = vld [vmem:[%s184_s3] sm:$0xff]  ;;  %v220_v1 = vld [vmem:[%s184_s3 + $0x8] sm:$0xff]  ;;  %v362_v2 = vld [vmem:[%s184_s3 + $0x10] sm:$0xff]  ;;  %s359_s14 = sshll.u32 %s627_s30, 4 }
  0x3b   : > { %s360_s5 = sld [smem:[#allocation2 + $0x1]]  ;;  %v363_v3 = vld [vmem:[%s184_s3 + $0x18] sm:$0xff]  ;;  %s205_s20 = scalar_lea.vmem [#allocation7], %s359_s14 }
  0x3c   : > { %s361_s8 = sld [smem:[#allocation2 + $0x2]]  ;;  %s238_s16 = scalar_lea.sflag [#allocation4], %s627_s30 }
  0x3d   : > { %s365_s17 = sshll.u32 (%p591_p11), %s560_s13, 1 }
  0x3e   : > { %s246_s19 = ssub.s32 (%p591_p11), 5, %s365_s17 }
  0x3f   : > { %p247_p4 = scmp.lt.s32.totalorder (%p591_p11), %s246_s19, 2 }
  0x40   : > { %v224_v4 = vstv %s216_s23 }
  0x41   : > { %v225_v5 = vmul.f32 %v224_v4, %v219_v0  ;;  %v227_v6 = vstv %s360_s5  ;;  %v226_v7 = vmul.f32 %v224_v4, %v220_v1 }
  0x42   : > { %v228_v8 = vmul.f32 %v362_v2, %v227_v6  ;;  %v229_v9 = vmul.f32 %v363_v3, %v227_v6  ;;  %v232_v10 = vstv %s361_s8 }
  0x44   : > { %v230_v11 = vadd.f32 %v228_v8, %v225_v5  ;;  %v231_v12 = vadd.f32 %v229_v9, %v226_v7  ;;  %244 = sbr.rel (!%p591_p11) target bundleno = 100 (0x64), region = 40 }
  0x46   : > { %v233_v13 = vadd.f32 %v232_v10, %v230_v11  ;;  %v234_v14 = vadd.f32 %v232_v10, %v231_v12 }
  0x48   : > { %235 = vst [vmem:[%s205_s20] sm:$0xff] %v233_v13  ;;  %236 = vst [vmem:[%s205_s20 + $0x8] sm:$0xff] %v234_v14 }
  0x49   : > { %s711_s19 = smov (!%p247_p4, %s246_s19), 2 }
  0x4a   : > { %s640_s24 = sshll.u32 %s711_s19, 7 }
  0x4b   : > { %s251_s25 = ssub.s32 256, %s640_s24 }
  0x4c   : > { %252 = vsyncadd %s238_s16, %s251_s25  ;;  %p367_p5 = scmp.ne.s32.totalorder %s640_s24, 0  ;;  %s376_s26 = sshll.u32 %s560_s13, 8 }
  0x4d   : > { %s650_s28 = scalar_lea.hbm %s698_s2, %s376_s26  ;;  %s257_s29 = sshll.u32 %s205_s20, 4  ;;  %s652_s29 = int_to_ptr.vmem [resolvable:$true] %s257_s29 }
  0x4e   : > { %s445_s4 = scalar_lea.vmem %s652_s29, %s640_s24  ;;  %s521_s6 = smov [#allocation7]  }
  0x4f   : > { %p446_p6 = scmp.ne.s32.totalorder %s652_s29, %s445_s4  ;;  %s449_s7 = sshll.u32 %s521_s6, 4  ;;  %s450_s7 = int_to_ptr.vmem [resolvable:$false] %s449_s7 }
  0x50   : > { %s451_s13 = scalar_lea.vmem %s450_s7, 512  ;;  %p452_p10 = scmp.lt.s32.totalorder %s652_s29, %s450_s7 }
  0x51   : > { %p447_p8 = pnand %p446_p6, %p367_p5  ;;  %p453_p11 = scmp.lt.s32.totalorder %s451_s13, %s445_s4 }
  0x53   : > { %p448_p9 = pneg %p447_p8  ;;  %p454_p13 = por %p453_p11, %p452_p10 }
  0x55   : > { %p455_p1 = pnand %p454_p13, %p448_p9 }
  0x57   : > { %458 = shalt.err (!%p455_p1)
}
  0x58   : > { %s459_s3 = scalar_lea.hbm %s650_s28, %s640_s24  ;;  %s463_s8 = scalar_lea.hbm %s698_s2, 640 }
  0x59   : > { %p460_p2 = scmp.ne.s32.totalorder %s650_s28, %s459_s3  ;;  %p464_p7 = scmp.lt.s32.totalorder %s650_s28, %s698_s2 }
  0x5a   : > { %p465_p4 = scmp.lt.s32.totalorder %s463_s8, %s459_s3 }
  0x5b   : > { %p461_p0 = pnand %p460_p2, %p367_p5 }
  0x5c   : > { %p466_p6 = por %p465_p4, %p464_p7 }
  0x5d   : > { %p462_p3 = pneg %p461_p0 }
  0x5f   : > { %p467_p8 = pnand %p466_p6, %p462_p3 }
  0x61   : > { %470 = shalt.err (!%p467_p8)
}
  0x62   : > { %s522_s17 = smov 128   ;;  %s523_s19 = smov 8  }
  0x63   : > { %263 = dma.vmem_to_hbm [thread:$0]  (%p367_p5), %s652_s29, %s640_s24, %s650_s28, %s238_s16, %s522_s17, %s522_s17, %s523_s19  }
  0x64 PF: > { %p393_p9 = scmp.ge.s32.totalorder %s513_s12, 2  ;;  %s272_s25 = sand.u32 1, %s501_s9  }
  0x65   : > { %s273_s26 = scalar_lea.sflag [#allocation4], %s272_s25 }
  0x66   : > { %p388_p10 = pnand %p393_p9, %p595_p12 }
  0x68   : > { %p389_p11 = pneg %p388_p10 }
  0x6a   : > { %496 = dma.done.wait (%p389_p11), %s273_s26, 256  }
  0x6b   : > { %498 = vsyncadd (%p389_p11), %s273_s26, 4294967040  ;;  %p16_p13 = scmp.ge.s32.totalorder %s564_s15, 5   ;;  %s704_s9 = smov %s505_s10 }
  0x6c   : > { %s705_s10 = smov %s509_s11  ;;  %s706_s11 = smov %s576_s18 }
  0x6d   : > { %s707_s12 = smov %s564_s15  ;;  %18 = sbr.rel (!%p16_p13) target bundleno = 6 (0x6), region = 84 }
  0x72   :  { %278 = vsyncpa [#allocation3], 1 }
  0x73   :  { %280 = vsyncpa [#allocation3 + $0x1], 1 }
  0x74   :  { %281 = vsyncpa [#allocation4], 1 }
  0x75   :  { %283 = vsyncpa [#allocation4 + $0x1], 1 }
  0x76   :  { %284 = vsyncpa [#allocation5], 1 }
  0x77   :  { %286 = vsyncpa [#allocation5 + $0x1], 1 }

</bundles_post_ra>
